<compile_context>
chip_gen: v5e
topology: v5e:2x2
jax: 0.10.0
libtpu: 0.0.40
codegen_flags: <defaults>
</compile_context>

<pallas_src>
import functools

import jax
import jax.numpy as jnp
from jax.experimental import pallas as pl
from jax.experimental.pallas import tpu as pltpu


IN_DIM = 29     # observation features
HID = 128       # hidden width of fc1/fc2
OUT_DIM = 3     # number of actions
OUT_PAD = 128   # lane-dense padded output width
LANES = 128     # slab lane width

# Row offsets inside the packed parameter slab (multiples of 16 so every
# sub-array starts on a sublane-tile boundary for both f32 and bf16).
_W1_OFF = 0      # (IN_DIM, HID)   rows [0, 29)   (region padded to 32)
_B1_OFF = 32     # (1, HID)        row 32
_W2_OFF = 48     # (HID, HID)      rows [48, 176)
_B2_OFF = 176    # (1, HID)        row 176
_W3_OFF = 192    # (HID, OUT_PAD)  rows [192, 320)  (cols >= 3 are zero)
_B3_OFF = 320    # (1, OUT_PAD)    row 320          (cols >= 3 are zero)
_P_ROWS = 336    # total slab rows


def _round_up(n, m):
    return ((n + m - 1) // m) * m


def qnet_kernel(x_ref, p_ref, o_ref):
    """One batch tile: (TM, 29) x packed params -> (TM, 128) lane-dense Q-values."""
    # Static slices of the resident parameter slab (sublane-aligned, zero-cost views).
    w1 = p_ref[_W1_OFF:_W1_OFF + IN_DIM, :]      # (29, 128)
    b1 = p_ref[_B1_OFF:_B1_OFF + 1, :]           # (1, 128)
    w2 = p_ref[_W2_OFF:_W2_OFF + HID, :]         # (128, 128)
    b2 = p_ref[_B2_OFF:_B2_OFF + 1, :]           # (1, 128)
    w3 = p_ref[_W3_OFF:_W3_OFF + HID, :]         # (128, 128), cols >= 3 zero
    b3 = p_ref[_B3_OFF:_B3_OFF + 1, :]           # (1, 128),   cols >= 3 zero

    x = x_ref[...].astype(w1.dtype)              # no-op for f32, bf16 cast otherwise

    # fc1 + relu (MXU matmul, f32 accumulation; bias add + relu on VPU)
    h = jnp.dot(x, w1, preferred_element_type=jnp.float32)
    h = jnp.maximum(h + b1.astype(jnp.float32), 0.0)
    # fc2 + relu
    h = jnp.dot(h.astype(w2.dtype), w2, preferred_element_type=jnp.float32)
    h = jnp.maximum(h + b2.astype(jnp.float32), 0.0)
    # fc3 (no activation); padded columns stay exactly zero-weight/zero-bias.
    out = jnp.dot(h.astype(w3.dtype), w3, preferred_element_type=jnp.float32)
    o_ref[...] = (out + b3.astype(jnp.float32)).astype(o_ref.dtype)


def qnet_forward_padded(x, param_slab, *, tm=None):
    """x: (B, 29) f32, param_slab: (336, 128) -> (B, 128) f32 (cols >= 3 zero)."""
    B = x.shape[0]
    if tm is None:
        tm = min(1024, _round_up(max(B, 1), 8))   # batch tile, multiple of 8
    grid = (pl.cdiv(B, tm),)

    return pl.pallas_call(
        qnet_kernel,
        out_shape=jax.ShapeDtypeStruct((B, OUT_PAD), jnp.float32),
        grid=grid,
        in_specs=[
            pl.BlockSpec((tm, IN_DIM), lambda i: (i, 0)),       # x: tiled batch
            pl.BlockSpec((_P_ROWS, LANES), lambda i: (0, 0)),   # weights resident
        ],
        out_specs=pl.BlockSpec((tm, OUT_PAD), lambda i: (i, 0)),
        compiler_params=pltpu.CompilerParams(
            dimension_semantics=("parallel",)),                 # megacore on v7x
    )(x, param_slab)


@functools.partial(jax.jit, static_argnames=("tm",))
def qnet_forward(x, param_slab, tm=None):
    """Convenience wrapper returning (B, 3); the [:, :3] slice fuses under jit."""
    return qnet_forward_padded(x, param_slab, tm=tm)[:, :OUT_DIM]


def prepare_params(params, dtype=jnp.float32):
    """One-time packing of (w1, b1, w2, b2, w3, b3) into a (336, 128) slab.

    Weights use the (in_features, out_features) convention: y = x @ W + b.
    Use dtype=jnp.bfloat16 for bf16 weights (f32 accumulation in-kernel).
    """
    w1, b1, w2, b2, w3, b3 = params
    slab = jnp.zeros((_P_ROWS, LANES), dtype)
    slab = slab.at[_W1_OFF:_W1_OFF + IN_DIM, :HID].set(w1.astype(dtype))
    slab = slab.at[_B1_OFF, :HID].set(b1.astype(dtype))
    slab = slab.at[_W2_OFF:_W2_OFF + HID, :HID].set(w2.astype(dtype))
    slab = slab.at[_B2_OFF, :HID].set(b2.astype(dtype))
    slab = slab.at[_W3_OFF:_W3_OFF + HID, :OUT_DIM].set(w3.astype(dtype))
    slab = slab.at[_B3_OFF, :OUT_DIM].set(b3.astype(dtype))
    return slab


def init_params(key):
    """Deterministic init mimicking nn.Linear (uniform(-1/sqrt(fan_in), +))."""
    ks = jax.random.split(key, 6)

    def linear(kw, kb, fan_in, fan_out):
        bound = 1.0 / jnp.sqrt(fan_in)
        w = jax.random.uniform(kw, (fan_in, fan_out), jnp.float32, -bound, bound)
        b = jax.random.uniform(kb, (fan_out,), jnp.float32, -bound, bound)
        return w, b

    w1, b1 = linear(ks[0], ks[1], IN_DIM, HID)
    w2, b2 = linear(ks[2], ks[3], HID, HID)
    w3, b3 = linear(ks[4], ks[5], HID, OUT_DIM)
    return (w1, b1, w2, b2, w3, b3)


def qnet_reference(x, params, dtype=jnp.float32):
    """Pure-JAX reference matching the kernel's dtype path (f32 accumulate)."""
    w1, b1, w2, b2, w3, b3 = [p.astype(dtype) for p in params]
    h = jnp.dot(x.astype(dtype), w1, preferred_element_type=jnp.float32)
    h = jnp.maximum(h + b1.astype(jnp.float32), 0.0)
    h = jnp.dot(h.astype(dtype), w2, preferred_element_type=jnp.float32)
    h = jnp.maximum(h + b2.astype(jnp.float32), 0.0)
    out = jnp.dot(h.astype(dtype), w3, preferred_element_type=jnp.float32)
    return out + b3.astype(jnp.float32)


if __name__ == "__main__":
    key = jax.random.PRNGKey(0)
    k_param, k_x, k_x2 = jax.random.split(key, 3)

    params = init_params(k_param)

    # --- f32 path, tiny batch (typical DQN acting: a couple of observations).
    slab_f32 = prepare_params(params, jnp.float32)
    x = jax.random.normal(k_x, (2, IN_DIM), jnp.float32)
    out = jax.block_until_ready(qnet_forward(x, slab_f32))
    ref = qnet_reference(x, params)
    assert out.shape == (2, OUT_DIM), out.shape
    assert jnp.allclose(out, ref, atol=1e-4, rtol=1e-4), (out, ref)

    # --- f32 path, ragged batch with a small explicit tile to exercise the
    #     batch grid (multiple tiles + a partial last tile, parallel axis).
    x2 = jax.random.normal(k_x2, (37, IN_DIM), jnp.float32)
    out2 = jax.block_until_ready(qnet_forward(x2, slab_f32, tm=8))
    ref2 = qnet_reference(x2, params)
    assert out2.shape == (37, OUT_DIM), out2.shape
    assert jnp.allclose(out2, ref2, atol=1e-4, rtol=1e-4), (out2, ref2)

    # --- bf16-weight path (v6e/v7x fast path), f32 MXU accumulation.
    slab_bf16 = prepare_params(params, jnp.bfloat16)
    out_bf = jax.block_until_ready(qnet_forward(x, slab_bf16))
    ref_bf = qnet_reference(x, params, dtype=jnp.bfloat16)
    assert jnp.allclose(out_bf, ref_bf, atol=1e-2, rtol=1e-2), (out_bf, ref_bf)

    # TODO(synk): sample_action's epsilon-greedy (host RNG + .item()) is host-side
    # control flow around the network, not part of the forward kernel.

    print("KERNEL_OK")
</pallas_src>

<mosaic_0001>
module attributes {stable_mosaic.version = 11 : i64} {
  func.func @qnet_kernel(%arg0: i32, %arg1: memref<8x29xf32, #tpu.memory_space<vmem>>, %arg2: memref<336x128xf32, #tpu.memory_space<vmem>>, %arg3: memref<8x128xf32, #tpu.memory_space<vmem>>) attributes {dimension_semantics = [#tpu.dimension_semantics<parallel>], iteration_bounds = array<i64: 1>, scalar_prefetch = 0 : i64, scratch_operands = 0 : i64, tpu.core_type = #tpu.core_type<tc>, window_params = [{transform_indices = @transform_0, window_bounds = array<i64: 8, 29>}, {pipeline_mode = #tpu.pipeline_mode<synchronous>, transform_indices = @transform_1, window_bounds = array<i64: 336, 128>}, {transform_indices = @transform_2, window_bounds = array<i64: 8, 128>}]} {
    %c0 = arith.constant 0 : index
    %c0_0 = arith.constant 0 : index
    %0 = vector.load %arg2[%c0, %c0_0] : memref<336x128xf32, #tpu.memory_space<vmem>>, vector<29x128xf32>
    %c32 = arith.constant 32 : index
    %c0_1 = arith.constant 0 : index
    %1 = vector.load %arg2[%c32, %c0_1] : memref<336x128xf32, #tpu.memory_space<vmem>>, vector<1x128xf32>
    %c48 = arith.constant 48 : index
    %c0_2 = arith.constant 0 : index
    %2 = vector.load %arg2[%c48, %c0_2] : memref<336x128xf32, #tpu.memory_space<vmem>>, vector<128x128xf32>
    %c176 = arith.constant 176 : index
    %c0_3 = arith.constant 0 : index
    %3 = vector.load %arg2[%c176, %c0_3] : memref<336x128xf32, #tpu.memory_space<vmem>>, vector<1x128xf32>
    %c192 = arith.constant 192 : index
    %c0_4 = arith.constant 0 : index
    %4 = vector.load %arg2[%c192, %c0_4] : memref<336x128xf32, #tpu.memory_space<vmem>>, vector<128x128xf32>
    %c320 = arith.constant 320 : index
    %c0_5 = arith.constant 0 : index
    %5 = vector.load %arg2[%c320, %c0_5] : memref<336x128xf32, #tpu.memory_space<vmem>>, vector<1x128xf32>
    %c0_6 = arith.constant 0 : index
    %c0_7 = arith.constant 0 : index
    %6 = vector.load %arg1[%c0_6, %c0_7] : memref<8x29xf32, #tpu.memory_space<vmem>>, vector<8x29xf32>
    %cst = arith.constant dense<0.000000e+00> : vector<8x128xf32>
    %7 = tpu.matmul %6, %0, %cst {dimension_numbers = #tpu.dot_dimension_numbers<[1], [0], [0], [1], [0, 0, 1, 1], [], []>} : vector<8x29xf32>, vector<29x128xf32>, vector<8x128xf32> -> vector<8x128xf32>
    %8 = vector.broadcast %1 : vector<1x128xf32> to vector<8x128xf32>
    %9 = arith.addf %7, %8 : vector<8x128xf32>
    %cst_8 = arith.constant 0.000000e+00 : f32
    %10 = vector.broadcast %cst_8 : f32 to vector<8x128xf32>
    %11 = arith.maximumf %9, %10 : vector<8x128xf32>
    %cst_9 = arith.constant dense<0.000000e+00> : vector<8x128xf32>
    %12 = tpu.matmul %11, %2, %cst_9 {dimension_numbers = #tpu.dot_dimension_numbers<[1], [0], [0], [1], [0, 0, 1, 1], [], []>} : vector<8x128xf32>, vector<128x128xf32>, vector<8x128xf32> -> vector<8x128xf32>
    %13 = vector.broadcast %3 : vector<1x128xf32> to vector<8x128xf32>
    %14 = arith.addf %12, %13 : vector<8x128xf32>
    %cst_10 = arith.constant 0.000000e+00 : f32
    %15 = vector.broadcast %cst_10 : f32 to vector<8x128xf32>
    %16 = arith.maximumf %14, %15 : vector<8x128xf32>
    %cst_11 = arith.constant dense<0.000000e+00> : vector<8x128xf32>
    %17 = tpu.matmul %16, %4, %cst_11 {dimension_numbers = #tpu.dot_dimension_numbers<[1], [0], [0], [1], [0, 0, 1, 1], [], []>} : vector<8x128xf32>, vector<128x128xf32>, vector<8x128xf32> -> vector<8x128xf32>
    %18 = vector.broadcast %5 : vector<1x128xf32> to vector<8x128xf32>
    %19 = arith.addf %17, %18 : vector<8x128xf32>
    %c0_12 = arith.constant 0 : index
    %c0_13 = arith.constant 0 : index
    %20 = vector.load %arg3[%c0_12, %c0_13] : memref<8x128xf32, #tpu.memory_space<vmem>>, vector<8x128xf32>
    tpu.vector_store %arg3[%c0_12, %c0_13], %19 {strides = array<i32>} : memref<8x128xf32, #tpu.memory_space<vmem>>, vector<8x128xf32>,
    return
  }
  func.func @transform_0(%arg0: i32) -> (i32, i32) {
    %c0_i32 = arith.constant 0 : i32
    %c0_i32_0 = arith.constant 0 : i32
    return %arg0, %c0_i32 : i32, i32
  }
  func.func @transform_1(%arg0: i32) -> (i32, i32) {
    %c0_i32 = arith.constant 0 : i32
    %c0_i32_0 = arith.constant 0 : i32
    %c0_i32_1 = arith.constant 0 : i32
    return %c0_i32, %c0_i32_0 : i32, i32
  }
  func.func @transform_2(%arg0: i32) -> (i32, i32) {
    %c0_i32 = arith.constant 0 : i32
    %c0_i32_0 = arith.constant 0 : i32
    return %arg0, %c0_i32 : i32, i32
  }
}

</mosaic_0001>

<bundles_post_ra>
// kernel: qnet_forward.1
= control target key start
LH: loop header
LB: loop body
LE: loop exit
PB: predicated region body
PF: predicated region fallthrough
CT: control target
= control target key end

     0   :  { %7 = vsyncpa [#allocation3], 0  ;;  %s305_s0 = inlined_call_operand.hbm [shape: f32[2,29], index: 0, kind: input, shape index: {}]   ;;  %s306_s1 = inlined_call_operand.hbm [shape: f32[336,128], index: 1, kind: input, shape index: {}]   ;;  %s307_s2 = inlined_call_operand.hbm [shape: f32[2,128], index: 2, kind: output, shape index: {}]  }
   0x1   :  { %8 = vsyncpa [#allocation6], 0 }
   0x2   :  { %9 = vsyncpa [#allocation4], 0 }
   0x3   :  { %13 = vsyncadd [#allocation3], 96  ;;  %s14_s11 = sshll.u32 %s305_s0, 4  ;;  %s268_s12 = smov [#allocation2]   ;;  %s15_s11 = int_to_ptr.hbm [resolvable:$true] %s14_s11 }
   0x4   :  { %s16_s13 = sshll.u32 %s268_s12, 4  ;;  %s27_s16 = sshll.u32 %s306_s1, 4  ;;  %s17_s13 = int_to_ptr.vmem [resolvable:$true] %s16_s13  ;;  %s28_s16 = int_to_ptr.hbm [resolvable:$true] %s27_s16 }
   0x5   :  { %s269_s17 = smov 32   ;;  %s270_s18 = smov 2  }
   0x6   :  { %22 = dma.hbm_to_vmem [thread:$0]  %s15_s11, 32, %s17_s13, [#allocation3], %s269_s17, %s269_s17, %s270_s18  }
   0x7   :  { %s271_s19 = smov [#allocation5]   ;;  %s272_s21 = smov 128  }
   0x8   :  { %s29_s20 = sshll.u32 %s271_s19, 4  ;;  %s273_s0 = smov 8   ;;  %s30_s20 = int_to_ptr.vmem [resolvable:$true] %s29_s20 }
   0x9   :  { %35 = dma.hbm_to_vmem [thread:$0]  %s28_s16, 5376, %s30_s20, [#allocation6], %s272_s21, %s272_s21, %s273_s0  }
   0xa   :  { %262 = dma.done.wait [#allocation3], 128  }
   0xb   :  { %263 = vsyncadd [#allocation3], 4294967168 }
   0xc   :  { %264 = dma.done.wait [#allocation6], 5376  }
   0xd   :  { %265 = vsyncadd [#allocation6], 4294961920  ;;  %vm89_vm0 = vcmask 1044480   ;;  %v47_v0 = vld [vmem:[#allocation5 + $0x18] sm:$0x1f]  ;;  %v46_v1 = vld [vmem:[#allocation5 + $0x10] sm:$0xff] }
   0xe   :  { %178 = vmatpush.msk.msra.mxu0 %vm89_vm0, %v47_v0  ;;  %v64_v2 = vld [vmem:[#allocation5 + $0xa8] sm:$0xff]  ;;  %v63_v4 = vld [vmem:[#allocation5 + $0xa0] sm:$0xff]  ;;  %v62_v5 = vld [vmem:[#allocation5 + $0x98] sm:$0xff]  ;;  %vm85_vm1 = vcmask 236544  }
   0xf   :  { %v45_v3 = vld [vmem:[#allocation5 + $0x8] sm:$0xff]  ;;  %115 = vmatpush.msra.mxu1 %v64_v2  ;;  %v44_v6 = vld [vmem:[#allocation5] sm:$0xff]  ;;  %v83_v7 = vld [vmem:[#allocation2] sm:$0xff] }
  0x10   :  { %106 = vmatpush.msra.mxu0 %v46_v1  ;;  %v61_v8 = vld [vmem:[#allocation5 + $0x90] sm:$0xff]  ;;  %v60_v9 = vld [vmem:[#allocation5 + $0x88] sm:$0xff]  ;;  %v59_v10 = vld [vmem:[#allocation5 + $0x80] sm:$0xff] }
  0x11   :  { %116 = vmatpush.msra.mxu1 %v63_v4  ;;  %v58_v11 = vld [vmem:[#allocation5 + $0x78] sm:$0xff]  ;;  %v57_v12 = vld [vmem:[#allocation5 + $0x70] sm:$0xff]  ;;  %v56_v13 = vld [vmem:[#allocation5 + $0x68] sm:$0xff] }
  0x12   :  { %107 = vmatpush.msra.mxu0 %v45_v3  ;;  %v55_v14 = vld [vmem:[#allocation5 + $0x60] sm:$0xff]  ;;  %v54_v15 = vld [vmem:[#allocation5 + $0x58] sm:$0xff]  ;;  %v53_v16 = vld [vmem:[#allocation5 + $0x50] sm:$0xff] }
  0x13   :  { %117 = vmatpush.msra.mxu1 %v62_v5  ;;  %v52_v17 = vld [vmem:[#allocation5 + $0x48] sm:$0xff]  ;;  %v51_v18 = vld [vmem:[#allocation5 + $0x40] sm:$0xff]  ;;  %v50_v19 = vld [vmem:[#allocation5 + $0x38] sm:$0xff] }
  0x14   :  { %108 = vmatpush.msra.mxu0 %v44_v6  ;;  %v49_v20 = vld [vmem:[#allocation5 + $0x30] sm:$0xff]  ;;  %v81_v21 = vld [vmem:[#allocation5 + $0x138] sm:$0xff]  ;;  %v79_v23 = vld [vmem:[#allocation5 + $0x128] sm:$0xff] }
  0x15   :  { %179 = vmatmul.msk.f32.vlgmr.msra.gmra.mxu0 %vm85_vm1, %v83_v7  ;;  %118 = vmatpush.msra.mxu1 %v61_v8  ;;  %v80_v22 = vld [vmem:[#allocation5 + $0x130] sm:$0xff]  ;;  %v78_v24 = vld [vmem:[#allocation5 + $0x120] sm:$0xff]  ;;  %v77_v25 = vld [vmem:[#allocation5 + $0x118] sm:$0xff] }
  0x16   :  { %137 = vmatpush.msra.mxu2 %v81_v21  ;;  %v76_v26 = vld [vmem:[#allocation5 + $0x110] sm:$0xff]  ;;  %v75_v27 = vld [vmem:[#allocation5 + $0x108] sm:$0xff]  ;;  %v74_v28 = vld [vmem:[#allocation5 + $0x100] sm:$0xff] }
  0x17   :  { %119 = vmatpush.msra.mxu1 %v60_v9  ;;  %v73_v29 = vld [vmem:[#allocation5 + $0xf8] sm:$0xff]  ;;  %v72_v30 = vld [vmem:[#allocation5 + $0xf0] sm:$0xff]  ;;  %v71_v31 = vld [vmem:[#allocation5 + $0xe8] sm:$0xff] }
  0x18   :  { %138 = vmatpush.msra.mxu2 %v80_v22  ;;  %v70_v32 = vld [vmem:[#allocation5 + $0xe0] sm:$0xff]  ;;  %v69_v33 = vld [vmem:[#allocation5 + $0xd8] sm:$0xff]  ;;  %v68_v38 = vld [vmem:[#allocation5 + $0xd0] sm:$0xff] }
  0x19   :  { %120 = vmatpush.msra.mxu1 %v59_v10  ;;  %v187_v34 = vld [vmem:[#allocation5 + $0x20] ss:$0 sm:$0xff]  ;;  %v67_v39 = vld [vmem:[#allocation5 + $0xc8] sm:$0xff]  ;;  %v188_v41 = vld [vmem:[#allocation5 + $0xb0] ss:$0 sm:$0xff] }
  0x1a   :  { %139 = vmatpush.msra.mxu2 %v79_v23  ;;  %v66_v40 = vld [vmem:[#allocation5 + $0xc0] sm:$0xff] }
  0x1b   :  { %121 = vmatpush.msra.mxu1 %v58_v11  ;;  %v189_v45 = vld [vmem:[#allocation5 + $0x140] ss:$0 sm:$0xff] }
  0x1c   :  { %140 = vmatpush.msra.mxu2 %v78_v24 }
  0x1d   :  { %122 = vmatpush.msra.mxu1 %v57_v12 }
  0x1e   :  { %141 = vmatpush.msra.mxu2 %v77_v25 }
  0x1f   :  { %123 = vmatpush.msra.mxu1 %v56_v13 }
  0x20   :  { %142 = vmatpush.msra.mxu2 %v76_v26 }
  0x21   :  { %124 = vmatpush.msra.mxu1 %v55_v14 }
  0x22   :  { %143 = vmatpush.msra.mxu2 %v75_v27 }
  0x23   :  { %125 = vmatpush.msra.mxu1 %v54_v15 }
  0x24   :  { %144 = vmatpush.msra.mxu2 %v74_v28 }
  0x25   :  { %126 = vmatpush.msra.mxu1 %v53_v16 }
  0x26   :  { %145 = vmatpush.msra.mxu2 %v73_v29 }
  0x27   :  { %127 = vmatpush.msra.mxu1 %v52_v17 }
  0x28   :  { %146 = vmatpush.msra.mxu2 %v72_v30 }
  0x29   :  { %128 = vmatpush.msra.mxu1 %v51_v18 }
  0x2a   :  { %147 = vmatpush.msra.mxu2 %v71_v31 }
  0x2b   :  { %129 = vmatpush.msra.mxu1 %v50_v19 }
  0x2c   :  { %148 = vmatpush.msra.mxu2 %v70_v32 }
  0x2d   :  { %130 = vmatpush.msra.mxu1 %v49_v20 }
  0x2e   :  { %149 = vmatpush.msra.mxu2 %v69_v33 }
  0x30   :  { %150 = vmatpush.msra.mxu2 %v68_v38 }
  0x32   :  { %151 = vmatpush.msra.mxu2 %v67_v39 }
  0x34   :  { %152 = vmatpush.msra.mxu2 %v66_v40 }
  0x92   :  { %v110_v35 = vpop.f32.mrf.mxu0 }
  0x93   :  { %v111_v36 = vadd.f32 %v187_v34, %v110_v35 }
  0x95   :  { %v113_v37 = vmax.f32 %v111_v36, 0.0 }
  0x97   :  { %131 = vmatmul.f32.vlgmr.msra.gmra.mxu1 %v113_v37 }
 0x114   :  { %v132_v42 = vpop.f32.mrf.mxu1 }
 0x115   :  { %v133_v43 = vadd.f32 %v188_v41, %v132_v42 }
 0x117   :  { %v135_v44 = vmax.f32 %v133_v43, 0.0 }
 0x119   :  { %153 = vmatmul.f32.vlgmr.msra.gmra.mxu2 %v135_v44 }
 0x19c   :  { %v154_v46 = vpop.f32.mrf.mxu2 }
 0x19d   :  { %v155_v47 = vadd.f32 %v189_v45, %v154_v46 }
 0x19f   :  { %157 = vst [vmem:[#allocation7] sm:$0xff] %v155_v47 }
 0x1a0   :  { %161 = vsyncadd [#allocation4], 96  ;;  %s164_s23 = sshll.u32 %s307_s2, 4  ;;  %s274_s24 = smov [#allocation7]   ;;  %s165_s23 = int_to_ptr.hbm [resolvable:$true] %s164_s23 }
 0x1a1   :  { %s162_s25 = sshll.u32 %s274_s24, 4  ;;  %s163_s25 = int_to_ptr.vmem [resolvable:$true] %s162_s25 }
 0x1a2   :  { %170 = dma.vmem_to_hbm [thread:$0]  %s163_s25, 32, %s165_s23, [#allocation4], %s269_s17, %s269_s17, %s270_s18  }
 0x1a3   :  { %266 = dma.done.wait [#allocation4], 128  }
 0x1a4   :  { %267 = vsyncadd [#allocation4], 4294967168 }
 0x1a5   :  { %175 = vsyncpa [#allocation3], 1 }
 0x1a6   :  { %176 = vsyncpa [#allocation6], 1 }
 0x1a7   :  { %177 = vsyncpa [#allocation4], 1 }

</bundles_post_ra>
